<compile_context>
chip_gen: v7x
topology: tpu7x:2x2x1
jax: 0.10.0
libtpu: 0.0.40
codegen_flags: <defaults>
</compile_context>

<pallas_src>
import functools

import jax
import jax.numpy as jnp
from jax import lax
from jax.experimental import pallas as pl
from jax.experimental.pallas import tpu as pltpu

EPS = 1e-6
TAU = 0.07


def _contrastive_kernel(x_ref, y_ref, part_ref, col_ref, inv_yn_ref,
                        *, matmul_dtype):
    p = pl.program_id(0)
    j = pl.program_id(1)
    n_inner = pl.num_programs(1)

    @pl.when(j == 0)
    def _init():
        part_ref[...] = jnp.zeros_like(part_ref)
        col_ref[...] = jnp.zeros_like(col_ref)
        # Hoisted, grid-invariant y work: 1/(max(||y_j||,eps)*tau) laid out
        # directly on the lane axis as a (1, B) row via a tiny M=1 MXU pass
        # (no cross-lane transpose). Recomputed once per row-split so it is
        # also correct when the "parallel" axis is sharded across TensorCores.
        yf = y_ref[...].astype(jnp.float32)
        ones_d = jnp.ones((1, yf.shape[1]), jnp.float32)
        yn2_row = lax.dot_general(
            ones_d, yf * yf,
            dimension_numbers=(((1,), (1,)), ((), ())),
            preferred_element_type=jnp.float32)                     # (1, B)
        yn_row = jnp.sqrt(yn2_row)
        inv_yn_ref[...] = pl.reciprocal(
            jnp.maximum(yn_row, EPS) * TAU, approx=False)           # (1, B)

    x_blk = x_ref[...]                                              # (TB, D)
    y_all = y_ref[...]                                              # (B,  D)
    tb = x_blk.shape[0]
    batch = y_all.shape[0]

    # Pairwise dots on the MXU: contract the lane (D) axis of both operands
    # (no transpose). Optional downcast of the matmul operands only.
    if matmul_dtype is not None:
        a = x_blk.astype(matmul_dtype)
        b = y_all.astype(matmul_dtype)
    else:
        a, b = x_blk, y_all
    dots = lax.dot_general(
        a, b, dimension_numbers=(((1,), (1,)), ((), ())),
        preferred_element_type=jnp.float32)                         # (TB, B)

    xf = x_blk.astype(jnp.float32)
    xn = jnp.sqrt(jnp.sum(xf * xf, axis=-1, keepdims=True))         # (TB, 1)
    inv_xn = pl.reciprocal(jnp.maximum(xn, EPS), approx=False)      # (TB, 1)

    # Rank-1 scale + exp (two broadcast multiplies, no (TB,B) max/reciprocal).
    E = jnp.exp(dots * inv_xn * inv_yn_ref[...])                    # (TB, B)

    # Positive (diagonal) term from (TB, 1) vectors (no iota masks).
    row0 = pl.multiple_of((p * n_inner + j) * tb, tb)
    y_blk = y_ref[pl.ds(row0, tb), :].astype(jnp.float32)           # (TB, D)
    diag_dot = jnp.sum(xf * y_blk, axis=-1, keepdims=True)          # (TB, 1)
    ynd = jnp.sqrt(jnp.sum(y_blk * y_blk, axis=-1, keepdims=True))
    diag_logits = diag_dot * inv_xn * pl.reciprocal(
        jnp.maximum(ynd, EPS) * TAU, approx=False)                  # (TB, 1)
    diag_sum = jnp.sum(diag_logits, keepdims=True)                  # (1, 1)

    # Row denominators: sum_j(E + eps) + eps = sum_j E + B*eps + eps.
    const = batch * EPS + EPS
    row_den = jnp.sum(E, axis=1, keepdims=True) + const             # (TB, 1)
    log_row = jnp.sum(jnp.log(row_den), keepdims=True)              # (1, 1)
    part_ref[...] += (2.0 * diag_sum - log_row).reshape(1, 1, 1)

    # Column partial sums of E on the MXU (free slot) instead of a
    # cross-sublane VPU/XLU reduce; accumulated per split, combined in XLA.
    ones_tb = jnp.ones((1, tb), jnp.float32)
    col_part = lax.dot_general(
        ones_tb, E, dimension_numbers=(((1,), (0,)), ((), ())),
        preferred_element_type=jnp.float32)                         # (1, B)
    col_ref[...] += col_part.reshape(1, 1, E.shape[1])


def _vmem_capacity_bytes():
    try:
        return int(pltpu.get_tpu_info().vmem_capacity_bytes)
    except Exception:
        return 64 * 1024 * 1024   # conservative fallback (v7x per-core VMEM)


def _working_set_bytes(tb, batch, dim, x_itemsize, y_itemsize):
    y_res = 2 * batch * dim * y_itemsize      # resident y (double-buffered)
    y_f32 = 2 * batch * dim * 4               # one-shot f32 cast + y*y temp
    x_strip = 2 * tb * dim * x_itemsize       # double-buffered x strip
    work = 3 * tb * batch * 4                 # live (tb, B) f32 tiles (dots/E)
    vecs = 3 * batch * 4 + 6 * tb * 4         # inv_yn row, col row, (tb,1) vecs
    return y_res + y_f32 + x_strip + work + vecs


def _pick_row_tile(batch, dim, x_itemsize, y_itemsize, budget):
    # Largest MXU-friendly tile that divides the batch and fits the budget.
    for tb in (512, 256, 128, 64, 32, 16, 8):
        if batch % tb == 0 and _working_set_bytes(
                tb, batch, dim, x_itemsize, y_itemsize) <= budget:
            return tb
    if batch <= 1024:
        return batch
    raise ValueError(
        "batch must be divisible by 8 (or <= 1024); "
        "TODO(synk): pad/mask ragged batches instead of one giant block")


@functools.partial(jax.jit, static_argnames=("row_tile", "matmul_dtype"))
def contrastive_loss(x, y, *, row_tile=None, matmul_dtype=None):
    B, D = x.shape
    assert y.shape == (B, D)

    cap = _vmem_capacity_bytes()
    budget = int(cap * 0.8)   # headroom for pipeline buffers / compiler scratch
    tb = (_pick_row_tile(B, D, x.dtype.itemsize, y.dtype.itemsize, budget)
          if row_tile is None else row_tile)
    assert B % tb == 0 and (tb % 8 == 0 or tb == B)
    n_blocks = B // tb

    # Dual-TensorCore (v7x) split of the row-block range: leading "parallel"
    # grid axis; per-split partials are combined below with trivial XLA ops.
    num_splits = 2 if (n_blocks % 2 == 0 and n_blocks >= 2) else 1
    n_inner = n_blocks // num_splits

    est = _working_set_bytes(tb, B, D, x.dtype.itemsize, y.dtype.itemsize)
    cp_kwargs = dict(dimension_semantics=("parallel", "arbitrary"))
    if est > 16 * 1024 * 1024:
        cp_kwargs["vmem_limit_bytes"] = min(int(est * 1.5), budget)

    kernel = functools.partial(_contrastive_kernel, matmul_dtype=matmul_dtype)

    grid_spec = pltpu.PrefetchScalarGridSpec(
        num_scalar_prefetch=0,
        grid=(num_splits, n_inner),
        in_specs=[
            # x row strip; DMA is tiny vs compute so default depth-2 buffering.
            pl.BlockSpec((tb, D), lambda p, j: (p * n_inner + j, 0)),
            # full y, resident (constant block index).
            pl.BlockSpec((B, D), lambda p, j: (0, 0)),
        ],
        out_specs=[
            pl.BlockSpec((1, 1, 1), lambda p, j: (p, 0, 0)),  # scalar partial
            pl.BlockSpec((1, 1, B), lambda p, j: (p, 0, 0)),  # col-den partial
        ],
        scratch_shapes=[
            pltpu.VMEM((1, B), jnp.float32),   # hoisted 1/(max(||y||,eps)*tau)
        ],
    )

    part, col = pl.pallas_call(
        kernel,
        out_shape=(jax.ShapeDtypeStruct((num_splits, 1, 1), jnp.float32),
                   jax.ShapeDtypeStruct((num_splits, 1, B), jnp.float32)),
        grid_spec=grid_spec,
        compiler_params=pltpu.CompilerParams(**cp_kwargs),
    )(x, y)

    # Trivial cross-split combine in plain XLA (a handful of scalars / one
    # (B,)-row of logs).
    const = B * EPS + EPS
    col_den = jnp.sum(col, axis=(0, 1)) + const              # (B,)
    log_col = jnp.sum(jnp.log(col_den))
    return (-1.0 / (2.0 * B)) * (jnp.sum(part) - log_col)


def _reference_loss(x, y):
    # Pure-JAX reference mirroring the PyTorch loop semantics.
    x = x.astype(jnp.float32)
    y = y.astype(jnp.float32)
    B = x.shape[0]

    def cos(a, b):
        num = jnp.sum(a * b, axis=-1)
        den = jnp.maximum(
            jnp.linalg.norm(a, axis=-1) * jnp.linalg.norm(b, axis=-1), EPS)
        return num / den

    log = 0.0
    for i in range(B):
        e = jnp.exp(cos(jnp.broadcast_to(x[i], y.shape), y) / TAU)
        log = log + jnp.log(e[i] / (jnp.sum(e + EPS) + EPS)) * (-1.0 / (2.0 * B))
    for i in range(B):
        e = jnp.exp(cos(jnp.broadcast_to(y[i], x.shape), x) / TAU)
        log = log + jnp.log(e[i] / (jnp.sum(e + EPS) + EPS)) * (-1.0 / (2.0 * B))
    return log


if __name__ == "__main__":
    B, D = 32, 64
    key = jax.random.PRNGKey(0)
    kx, ky = jax.random.split(key)
    x = jax.random.normal(kx, (B, D), dtype=jnp.float32)
    y = jax.random.normal(ky, (B, D), dtype=jnp.float32)

    ref = jax.block_until_ready(_reference_loss(x, y))

    # row_tile=8 -> 4 row blocks -> grid (2 splits, 2 inner steps): exercises
    # the dual-core split, per-split accumulation, and the wrapper combine.
    loss = jax.block_until_ready(contrastive_loss(x, y, row_tile=8))
    assert jnp.allclose(loss, ref, rtol=1e-4, atol=1e-4), (loss, ref)

    # Auto-picked tile (single block, single split).
    loss1 = jax.block_until_ready(contrastive_loss(x, y))
    assert jnp.allclose(loss1, ref, rtol=1e-4, atol=1e-4), (loss1, ref)

    print("KERNEL_OK")
</pallas_src>

<mosaic_0001>
module attributes {stable_mosaic.version = 11 : i64} {
  func.func @_contrastive_kernel(%arg0: i32, %arg1: i32, %arg2: memref<8x64xf32, #tpu.memory_space<vmem>>, %arg3: memref<32x64xf32, #tpu.memory_space<vmem>>, %arg4: memref<1x1x1xf32, #tpu.memory_space<vmem>>, %arg5: memref<1x1x32xf32, #tpu.memory_space<vmem>>, %arg6: memref<1x32xf32, #tpu.memory_space<vmem>>) attributes {dimension_semantics = [#tpu.dimension_semantics<parallel>, #tpu.dimension_semantics<arbitrary>], iteration_bounds = array<i64: 2, 2>, scalar_prefetch = 0 : i64, scratch_operands = 1 : i64, tpu.core_type = #tpu.core_type<tc>, window_params = [{transform_indices = @transform_0, window_bounds = array<i64: 8, 64>}, {pipeline_mode = #tpu.pipeline_mode<synchronous>, transform_indices = @transform_1, window_bounds = array<i64: 32, 64>}, {transform_indices = @transform_2, window_bounds = array<i64: 1, 1, 1>}, {transform_indices = @transform_3, window_bounds = array<i64: 1, 1, 32>}]} {
    %c0_i32 = arith.constant 0 : i32
    %0 = arith.cmpi eq, %arg1, %c0_i32 : i32
    %1 = arith.extui %0 : i1 to i32
    %c0_i32_0 = arith.constant 0 : i32
    %2 = arith.cmpi ne, %1, %c0_i32_0 : i32
    scf.if %2 {
      %cst_32 = arith.constant 0.000000e+00 : f32
      %67 = vector.broadcast %cst_32 : f32 to vector<1x1x1xf32>
      %c0_33 = arith.constant 0 : index
      %c0_34 = arith.constant 0 : index
      %c0_35 = arith.constant 0 : index
      %68 = vector.load %arg4[%c0_33, %c0_34, %c0_35] : memref<1x1x1xf32, #tpu.memory_space<vmem>>, vector<1x1x1xf32>
      tpu.vector_store %arg4[%c0_33, %c0_34, %c0_35], %67 {strides = array<i32>} : memref<1x1x1xf32, #tpu.memory_space<vmem>>, vector<1x1x1xf32>,
      %cst_36 = arith.constant 0.000000e+00 : f32
      %69 = vector.broadcast %cst_36 : f32 to vector<1x1x32xf32>
      %c0_37 = arith.constant 0 : index
      %c0_38 = arith.constant 0 : index
      %c0_39 = arith.constant 0 : index
      %70 = vector.load %arg5[%c0_37, %c0_38, %c0_39] : memref<1x1x32xf32, #tpu.memory_space<vmem>>, vector<1x1x32xf32>
      tpu.vector_store %arg5[%c0_37, %c0_38, %c0_39], %69 {strides = array<i32>} : memref<1x1x32xf32, #tpu.memory_space<vmem>>, vector<1x1x32xf32>,
      %c0_40 = arith.constant 0 : index
      %c0_41 = arith.constant 0 : index
      %71 = vector.load %arg3[%c0_40, %c0_41] : memref<32x64xf32, #tpu.memory_space<vmem>>, vector<32x64xf32>
      %cst_42 = arith.constant 1.000000e+00 : f32
      %72 = vector.broadcast %cst_42 : f32 to vector<1x64xf32>
      %73 = arith.mulf %71, %71 : vector<32x64xf32>
      %cst_43 = arith.constant dense<0.000000e+00> : vector<1x32xf32>
      %74 = tpu.matmul %72, %73, %cst_43 {dimension_numbers = #tpu.dot_dimension_numbers<[1], [1], [0], [0], [0, 0, 1, 0], [], []>} : vector<1x64xf32>, vector<32x64xf32>, vector<1x32xf32> -> vector<1x32xf32>
      %75 = math.sqrt %74 : vector<1x32xf32>
      %cst_44 = arith.constant 9.99999997E-7 : f32
      %76 = vector.broadcast %cst_44 : f32 to vector<1x32xf32>
      %77 = arith.maximumf %75, %76 : vector<1x32xf32>
      %cst_45 = arith.constant 7.000000e-02 : f32
      %78 = vector.broadcast %cst_45 : f32 to vector<1x32xf32>
      %79 = arith.mulf %77, %78 : vector<1x32xf32>
      %80 = tpu.reciprocal %79 : vector<1x32xf32> -> vector<1x32xf32>
      %c0_46 = arith.constant 0 : index
      %c0_47 = arith.constant 0 : index
      %81 = vector.load %arg6[%c0_46, %c0_47] : memref<1x32xf32, #tpu.memory_space<vmem>>, vector<1x32xf32>
      tpu.vector_store %arg6[%c0_46, %c0_47], %80 {strides = array<i32>} : memref<1x32xf32, #tpu.memory_space<vmem>>, vector<1x32xf32>,
    } else {
    }
    %c0 = arith.constant 0 : index
    %c0_1 = arith.constant 0 : index
    %3 = vector.load %arg2[%c0, %c0_1] : memref<8x64xf32, #tpu.memory_space<vmem>>, vector<8x64xf32>
    %c0_2 = arith.constant 0 : index
    %c0_3 = arith.constant 0 : index
    %4 = vector.load %arg3[%c0_2, %c0_3] : memref<32x64xf32, #tpu.memory_space<vmem>>, vector<32x64xf32>
    %cst = arith.constant dense<0.000000e+00> : vector<8x32xf32>
    %5 = tpu.matmul %3, %4, %cst {dimension_numbers = #tpu.dot_dimension_numbers<[1], [1], [0], [0], [0, 0, 1, 0], [], []>} : vector<8x64xf32>, vector<32x64xf32>, vector<8x32xf32> -> vector<8x32xf32>
    %6 = arith.mulf %3, %3 : vector<8x64xf32>
    %cst_4 = arith.constant dense<0.000000e+00> : vector<8xf32>
    %7 = vector.multi_reduction <add>, %6, %cst_4 [1] : vector<8x64xf32> to vector<8xf32>
    %8 = vector.shape_cast %7 : vector<8xf32> to vector<8x1xf32>
    %9 = math.sqrt %8 : vector<8x1xf32>
    %cst_5 = arith.constant 9.99999997E-7 : f32
    %10 = vector.broadcast %cst_5 : f32 to vector<8x1xf32>
    %11 = arith.maximumf %9, %10 : vector<8x1xf32>
    %12 = tpu.reciprocal %11 : vector<8x1xf32> -> vector<8x1xf32>
    %13 = vector.broadcast %12 : vector<8x1xf32> to vector<8x32xf32>
    %14 = arith.mulf %5, %13 : vector<8x32xf32>
    %c0_6 = arith.constant 0 : index
    %c0_7 = arith.constant 0 : index
    %15 = vector.load %arg6[%c0_6, %c0_7] : memref<1x32xf32, #tpu.memory_space<vmem>>, vector<1x32xf32>
    %16 = vector.broadcast %15 : vector<1x32xf32> to vector<8x32xf32>
    %17 = arith.mulf %14, %16 : vector<8x32xf32>
    %18 = math.exp %17 : vector<8x32xf32>
    %c2_i32 = arith.constant 2 : i32
    %19 = arith.muli %arg0, %c2_i32 : i32
    %20 = arith.addi %19, %arg1 : i32
    %c8_i32 = arith.constant 8 : i32
    %21 = arith.muli %20, %c8_i32 : i32
    %22 = tpu.assume_multiple %21, 8 : i32
    %23 = arith.index_cast %22 : i32 to index
    %c0_8 = arith.constant 0 : index
    %24 = vector.load %arg3[%23, %c0_8] : memref<32x64xf32, #tpu.memory_space<vmem>>, vector<8x64xf32>
    %25 = arith.mulf %3, %24 : vector<8x64xf32>
    %cst_9 = arith.constant dense<0.000000e+00> : vector<8xf32>
    %26 = vector.multi_reduction <add>, %25, %cst_9 [1] : vector<8x64xf32> to vector<8xf32>
    %27 = vector.shape_cast %26 : vector<8xf32> to vector<8x1xf32>
    %28 = arith.mulf %24, %24 : vector<8x64xf32>
    %cst_10 = arith.constant dense<0.000000e+00> : vector<8xf32>
    %29 = vector.multi_reduction <add>, %28, %cst_10 [1] : vector<8x64xf32> to vector<8xf32>
    %30 = vector.shape_cast %29 : vector<8xf32> to vector<8x1xf32>
    %31 = math.sqrt %30 : vector<8x1xf32>
    %32 = arith.mulf %27, %12 : vector<8x1xf32>
    %cst_11 = arith.constant 9.99999997E-7 : f32
    %33 = vector.broadcast %cst_11 : f32 to vector<8x1xf32>
    %34 = arith.maximumf %31, %33 : vector<8x1xf32>
    %cst_12 = arith.constant 7.000000e-02 : f32
    %35 = vector.broadcast %cst_12 : f32 to vector<8x1xf32>
    %36 = arith.mulf %34, %35 : vector<8x1xf32>
    %37 = tpu.reciprocal %36 : vector<8x1xf32> -> vector<8x1xf32>
    %38 = arith.mulf %32, %37 : vector<8x1xf32>
    %39 = vector.shape_cast %38 : vector<8x1xf32> to vector<1x8x1xf32>
    %cst_13 = arith.constant dense<0.000000e+00> : vector<1xf32>
    %40 = vector.multi_reduction <add>, %39, %cst_13 [1, 2] : vector<1x8x1xf32> to vector<1xf32>
    %41 = vector.shape_cast %40 : vector<1xf32> to vector<1x1x1xf32>
    %42 = vector.extract %41[0, 0, 0] : f32 from vector<1x1x1xf32>
    %43 = vector.broadcast %42 : f32 to vector<1x1xf32>
    %cst_14 = arith.constant dense<0.000000e+00> : vector<8xf32>
    %44 = vector.multi_reduction <add>, %18, %cst_14 [1] : vector<8x32xf32> to vector<8xf32>
    %45 = vector.shape_cast %44 : vector<8xf32> to vector<8x1xf32>
    %cst_15 = arith.constant 3.300000e-05 : f32
    %46 = vector.broadcast %cst_15 : f32 to vector<8x1xf32>
    %47 = arith.addf %45, %46 : vector<8x1xf32>
    %48 = math.log %47 : vector<8x1xf32>
    %49 = vector.shape_cast %48 : vector<8x1xf32> to vector<1x8x1xf32>
    %cst_16 = arith.constant dense<0.000000e+00> : vector<1xf32>
    %50 = vector.multi_reduction <add>, %49, %cst_16 [1, 2] : vector<1x8x1xf32> to vector<1xf32>
    %51 = vector.shape_cast %50 : vector<1xf32> to vector<1x1x1xf32>
    %52 = vector.extract %51[0, 0, 0] : f32 from vector<1x1x1xf32>
    %53 = vector.broadcast %52 : f32 to vector<1x1xf32>
    %c0_17 = arith.constant 0 : index
    %c0_18 = arith.constant 0 : index
    %c0_19 = arith.constant 0 : index
    %54 = vector.load %arg4[%c0_17, %c0_18, %c0_19] : memref<1x1x1xf32, #tpu.memory_space<vmem>>, vector<1x1x1xf32>
    %cst_20 = arith.constant 2.000000e+00 : f32
    %55 = vector.broadcast %cst_20 : f32 to vector<1x1xf32>
    %56 = arith.mulf %55, %43 : vector<1x1xf32>
    %57 = arith.subf %56, %53 : vector<1x1xf32>
    %58 = vector.shape_cast %57 : vector<1x1xf32> to vector<1x1x1xf32>
    %59 = arith.addf %54, %58 : vector<1x1x1xf32>
    %c0_21 = arith.constant 0 : index
    %c0_22 = arith.constant 0 : index
    %c0_23 = arith.constant 0 : index
    %60 = vector.load %arg4[%c0_21, %c0_22, %c0_23] : memref<1x1x1xf32, #tpu.memory_space<vmem>>, vector<1x1x1xf32>
    tpu.vector_store %arg4[%c0_21, %c0_22, %c0_23], %59 {strides = array<i32>} : memref<1x1x1xf32, #tpu.memory_space<vmem>>, vector<1x1x1xf32>,
    %cst_24 = arith.constant 1.000000e+00 : f32
    %61 = vector.broadcast %cst_24 : f32 to vector<1x8xf32>
    %cst_25 = arith.constant dense<0.000000e+00> : vector<1x32xf32>
    %62 = tpu.matmul %61, %18, %cst_25 {dimension_numbers = #tpu.dot_dimension_numbers<[1], [0], [0], [1], [0, 0, 1, 1], [], []>} : vector<1x8xf32>, vector<8x32xf32>, vector<1x32xf32> -> vector<1x32xf32>
    %c0_26 = arith.constant 0 : index
    %c0_27 = arith.constant 0 : index
    %c0_28 = arith.constant 0 : index
    %63 = vector.load %arg5[%c0_26, %c0_27, %c0_28] : memref<1x1x32xf32, #tpu.memory_space<vmem>>, vector<1x1x32xf32>
    %64 = vector.shape_cast %62 : vector<1x32xf32> to vector<1x1x32xf32>
    %65 = arith.addf %63, %64 : vector<1x1x32xf32>
    %c0_29 = arith.constant 0 : index
    %c0_30 = arith.constant 0 : index
    %c0_31 = arith.constant 0 : index
    %66 = vector.load %arg5[%c0_29, %c0_30, %c0_31] : memref<1x1x32xf32, #tpu.memory_space<vmem>>, vector<1x1x32xf32>
    tpu.vector_store %arg5[%c0_29, %c0_30, %c0_31], %65 {strides = array<i32>} : memref<1x1x32xf32, #tpu.memory_space<vmem>>, vector<1x1x32xf32>,
    return
  }
  func.func @transform_0(%arg0: i32, %arg1: i32) -> (i32, i32) {
    %c2_i32 = arith.constant 2 : i32
    %0 = arith.muli %arg0, %c2_i32 : i32
    %1 = arith.addi %0, %arg1 : i32
    %c0_i32 = arith.constant 0 : i32
    %c0_i32_0 = arith.constant 0 : i32
    return %1, %c0_i32 : i32, i32
  }
  func.func @transform_1(%arg0: i32, %arg1: i32) -> (i32, i32) {
    %c0_i32 = arith.constant 0 : i32
    %c0_i32_0 = arith.constant 0 : i32
    %c0_i32_1 = arith.constant 0 : i32
    return %c0_i32, %c0_i32_0 : i32, i32
  }
  func.func @transform_2(%arg0: i32, %arg1: i32) -> (i32, i32, i32) {
    %c0_i32 = arith.constant 0 : i32
    %c0_i32_0 = arith.constant 0 : i32
    %c0_i32_1 = arith.constant 0 : i32
    return %arg0, %c0_i32, %c0_i32_0 : i32, i32, i32
  }
  func.func @transform_3(%arg0: i32, %arg1: i32) -> (i32, i32, i32) {
    %c0_i32 = arith.constant 0 : i32
    %c0_i32_0 = arith.constant 0 : i32
    %c0_i32_1 = arith.constant 0 : i32
    return %arg0, %c0_i32, %c0_i32_0 : i32, i32, i32
  }
}

</mosaic_0001>

<bundles_post_ra>
// kernel: contrastive_loss.1
= control target key start
LH: loop header
LB: loop body
LE: loop exit
PB: predicated region body
PF: predicated region fallthrough
CT: control target
= control target key end

     0   :  { %9 = vsyncpa [#allocation4], 0  ;;  %s1275_s0 = inlined_call_operand.hbm [shape: f32[32,64], index: 0, kind: input, shape index: {}]   ;;  %s1276_s1 = inlined_call_operand.hbm [shape: f32[32,64], index: 1, kind: input, shape index: {}]   ;;  %s1277_s2 = inlined_call_operand.vmem [shape: f32[2,1,1], index: 2, kind: output, shape index: {0}]   ;;  %s1278_s3 = inlined_call_operand.vmem [shape: f32[2,1,32], index: 3, kind: output, shape index: {1}]  }
   0x1   :  { %11 = vsyncpa [#allocation4 + $0x1], 0 }
   0x2   :  { %12 = vsyncpa [#allocation6], 0  ;;  %s1065_s12 = smov 0   ;;  %s1067_s13 = smov 0  }
   0x3   :  { %s1069_s14 = smov 0   ;;  %s1071_s15 = smov 0  }
   0x4   :  { %s1073_s16 = smov 0   ;;  %s1075_s17 = smov 0  }
   0x5   :  { %s1077_s18 = smov 0   ;;  %s1079_s19 = smov 0  }
   0x6 LB: > { %s706_s20 = sadd.s32 4294967295, %s1031_s19   ;;  %p54_p0 = scmp.ne.s32.totalorder %s1007_s13, %s1003_s12  ;;  %s1031_s19 = sphi %s1079_s19, %s18_s19   ;;  %s1027_s18 = sphi %s1077_s18, %s1298_s18   ;;  %s1023_s17 = sphi %s1075_s17, %s1297_s17   ;;  %s1019_s16 = sphi %s1073_s16, %s1296_s16   ;;  %s1015_s15 = sphi %s1071_s15, %s1295_s15   ;;  %s1011_s14 = sphi %s1069_s14, %s1294_s14   ;;  %s1007_s13 = sphi %s1067_s13, %s1293_s13   ;;  %s1003_s12 = sphi %s1065_s12, %s1292_s12  }
   0x7   : > { %p1105_p1 = scmp.eq.s32.totalorder %s706_s20, 0  ;;  %p710_p2 = scmp.ge.s32.totalorder %s1031_s19, 1 }
   0x8   : > { %p138_p3 = scmp.lt.s32.totalorder %s1031_s19, 5  ;;  %s1033_s24 = smov [#allocation5]  }
   0x9   : > { %s1283_s21 = scalar_select %p1105_p1, 1, 0 }
   0xa   : > { %p1113_p4 = por %p1105_p1, %p54_p0  ;;  %p1117_p5 = pnand %p710_p2, %p138_p3 }
   0xb   : > { %s150_s25 = sshll.u32 %s1033_s24, 4  ;;  %s903_s29 = scalar_lea.hbm %s1276_s1, 512  ;;  %s151_s25 = int_to_ptr.vmem [resolvable:$true] %s150_s25 }
   0xc   : > { %s1284_s22 = scalar_select %p1113_p4, 1, 0 }
   0xd   : > { %s1285_s23 = scalar_select %p1117_p5, 1, 0 }
   0xe   : > { %p801_p6 = pneg %p1117_p5  ;;  %p904_p8 = scmp.ne.s32.totalorder %s1276_s1, %s903_s29 }
   0xf   : > { %p910_p12 = scmp.lt.u32.totalorder %s903_s29, %s1276_s1 }
  0x10   : > { %p1125_p7 = pnand %p801_p6, %p1105_p1 }
  0x12   : > { %p905_p9 = pneg %p1125_p7 }
  0x14   : > { %p906_p10 = pnand %p905_p9, %p904_p8 }
  0x16   : > { %p907_p11 = pneg %p906_p10 }
  0x18   : > { %p912_p13 = pnand %p910_p12, %p907_p11 }
  0x1a   : > { %915 = shalt.err (!%p912_p13)
}
  0x1b   : > { %s916_s7 = scalar_lea.vmem %s151_s25, 512  ;;  %p924_p6 = scmp.lt.s32.totalorder %s151_s25, %s151_s25 }
  0x1c   : > { %p917_p0 = scmp.ne.s32.totalorder %s151_s25, %s916_s7  ;;  %p925_p1 = scmp.lt.s32.totalorder %s916_s7, %s916_s7 }
  0x1e   : > { %p919_p2 = pnand %p917_p0, %p905_p9  ;;  %p926_p4 = por %p925_p1, %p924_p6 }
  0x20   : > { %p920_p3 = pneg %p919_p2 }
  0x22   : > { %p927_p5 = pnand %p926_p4, %p920_p3 }
  0x24   : > { %930 = shalt.err (!%p927_p5)
}
  0x25   : > { %s1034_s8 = smov 128   ;;  %s1035_s9 = smov 8  }
  0x26   : > { %804 = dma.hbm_to_vmem [thread:$0]  (!%p1125_p7), %s1276_s1, 512, %s151_s25, [#allocation6], %s1034_s8, %s1034_s8, %s1035_s9  }
  0x27   : > { %s27_s12 = sadd.s32 1, %s1023_s17  ;;  %s30_s20 = sadd.s32 1, %s1027_s18 }
  0x28   : > { %p28_p1 = scmp.ge.s32.totalorder %s27_s12, 2  ;;  %s708_s24 = sshll.u32 %s1027_s18, 1 }
  0x29   : > { %s41_s27 = sadd.s32 1, %s1011_s14  ;;  %s35_s28 = sadd.s32 %s1023_s17, %s708_s24 }
  0x2a   : > { %s1300_s12 = smov (%p28_p1, %s27_s12), 0  ;;  %s1302_s20 = smov (!%p28_p1, %s30_s20), %s1027_s18 }
  0x2b   : > { %p48_p4 = scmp.ne.s32.totalorder %s1011_s14, %s1007_s13  ;;  %p32_p5 = scmp.ge.s32.totalorder %s1302_s20, 2 }
  0x2c   : > { %p49_p8 = scmp.eq.s32.totalorder %s1031_s19, 0  ;;  %p810_p9 = scmp.lt.s32.totalorder %s1031_s19, 4 }
  0x2d   : > { %s164_s26 = sand.u32 1, %s1011_s14   ;;  %s1304_s20 = smov (%p32_p5, %s1302_s20), 0 }
  0x2e   : > { %p50_p7 = por %p49_p8, %p48_p4  ;;  %s709_s25 = sshll.u32 %s1304_s20, 1 }
  0x2f   : > { %s713_s29 = sshll.u32 %s164_s26, 3  ;;  %s37_s30 = sadd.s32 %s709_s25, %s1300_s12 }
  0x30   : > { %s38_s4 = ssub.s32 %s35_s28, %s37_s30  ;;  %s715_s5 = sshll.u32 %s35_s28, 7 }
  0x31   : > { %p39_p10 = scmp.eq.s32.totalorder %s38_s4, 0  ;;  %s1165_s8 = scalar_lea.hbm %s1275_s0, %s715_s5 }
  0x32   : > { %s168_s9 = scalar_lea.vmem [#allocation3], %s713_s29  ;;  %p1169_p11 = pnand %p810_p9, %p50_p7 }
  0x33   : > { %s177_s10 = sshll.u32 %s168_s9, 4  ;;  %s165_s28 = scalar_lea.sflag [#allocation4], %s164_s26  ;;  %s1176_s10 = int_to_ptr.vmem [resolvable:$true] %s177_s10 }
  0x34   : > { %s1174_s24 = scalar_select %p39_p10, %s1011_s14, %s41_s27  }
  0x35   : > { %s931_s25 = scalar_lea.hbm %s1165_s8, 128  ;;  %p933_p13 = pneg %p1169_p11 }
  0x36   : > { %p932_p12 = scmp.ne.s32.totalorder %s1165_s8, %s931_s25  ;;  %s936_s4 = scalar_lea.hbm %s1275_s0, 512 }
  0x37   : > { %p937_p3 = scmp.lt.u32.totalorder %s1165_s8, %s1275_s0  ;;  %p938_p6 = scmp.lt.u32.totalorder %s936_s4, %s931_s25 }
  0x38   : > { %p934_p0 = pnand %p933_p13, %p932_p12  ;;  %p940_p4 = scmp.lt.u32.totalorder %s931_s25, %s1165_s8 }
  0x39   : > { %p939_p1 = por %p938_p6, %p937_p3 }
  0x3a   : > { %p935_p2 = pneg %p934_p0 }
  0x3b   : > { %p941_p5 = por %p940_p4, %p939_p1 }
  0x3d   : > { %p942_p8 = pnand %p941_p5, %p935_p2 }
  0x3f   : > { %945 = shalt.err (!%p942_p8)
}
  0x40   : > { %s946_s27 = scalar_lea.vmem %s1176_s10, 128  ;;  %s1036_s26 = smov [#allocation3]  }
  0x41   : > { %p947_p9 = scmp.ne.s32.totalorder %s1176_s10, %s946_s27  ;;  %s951_s7 = sshll.u32 %s1036_s26, 4  ;;  %s952_s7 = int_to_ptr.vmem [resolvable:$false] %s951_s7 }
  0x42   : > { %s953_s9 = scalar_lea.vmem %s952_s7, 256  ;;  %p954_p12 = scmp.lt.s32.totalorder %s1176_s10, %s952_s7 }
  0x43   : > { %p949_p7 = pnand %p947_p9, %p933_p13  ;;  %p955_p0 = scmp.lt.s32.totalorder %s953_s9, %s946_s27 }
  0x45   : > { %p950_p10 = pneg %p949_p7  ;;  %p956_p3 = por %p955_p0, %p954_p12 }
  0x47   : > { %p957_p6 = pnand %p956_p3, %p950_p10 }
  0x49   : > { %960 = shalt.err (!%p957_p6)
}
  0x4a   : > { %808 = dma.hbm_to_vmem [thread:$0]  (!%p1169_p11), %s1165_s8, 128, %s1176_s10, %s165_s28  }
  0x4b   : > { %p1288_p2 = scmp.ne.s32.totalorder %s1285_s23, 0 }
  0x4c   : > { %s188_s25 = sand.u32 (!%p1288_p2), 1, %s1007_s13   ;;  %p1289_p13 = scmp.ne.s32.totalorder (!%p1288_p2), %s1284_s22, 0 }
  0x4d   : > { %186 = sbr.rel (%p1288_p2) target bundleno = 969 (0x3c9), region = 28  ;;  %s1206_s29 = sshll.u32 (!%p1288_p2), %s188_s25, 3 }
  0x4e   : > { %s189_s30 = scalar_lea.sflag (!%p1288_p2), [#allocation4], %s188_s25  ;;  %s192_s4 = scalar_lea.vmem (!%p1288_p2), [#allocation3], %s1206_s29 }
  0x54   : > { %994 = dma.done.wait (%p1289_p13), %s189_s30, 128  }
  0x55   : > { %996 = vsyncadd (%p1289_p13), %s189_s30, 4294967168  ;;  %p1290_p1 = scmp.ne.s32.totalorder %s1283_s21, 0 }
  0x57   : > { %998 = dma.done.wait (%p1290_p1), [#allocation6], 512  }
  0x58   : > { %1000 = vsyncadd (%p1290_p1), [#allocation6], 4294966784  ;;  %p222_p11 = scmp.lt.s32.totalorder %s1019_s16, 1  ;;  %p719_p4 = scmp.ne.s32.totalorder %s1015_s15, 0 }
  0x59   : > { %v236_v0 = vld [vmem:[#allocation5] sm:$0xff] (!%p719_p4)  ;;  %v237_v1 = vld [vmem:[#allocation5 + $0x8] sm:$0xff] (!%p719_p4)  ;;  %vm244_vm0 = vcmask (!%p719_p4), 523264   ;;  %vm232_vm1 = vcmask (!%p719_p4), 0   ;;  %v1037_v2 = vmov (!%p719_p4), 0.0|0.0   ;;  %v238_v5 = vld [vmem:[#allocation5 + $0x10] sm:$0xff] (!%p719_p4) }
  0x5a   : > { %s223_s23 = scalar_select %p222_p11, %s1019_s16, 1 }
  0x5b   : > { %231 = sbr.rel (%p719_p4) target bundleno = 353 (0x161), region = 40  ;;  %775 = vmatprep.subr.bf16.mxu0 (!%p719_p4), %v1037_v2  ;;  %v240_v3 = vmul.f32 (!%p719_p4), %v236_v0, %v236_v0  ;;  %v241_v4 = vmul.f32 (!%p719_p4), %v237_v1, %v237_v1  ;;  %vm777_vm2 = vmpackc.low (!%p719_p4), %vm244_vm0, %vm244_vm0  ;;  %v239_v6 = vld [vmem:[#allocation5 + $0x18] sm:$0xff] (!%p719_p4)  ;;  %v1038_v7 = vmov (!%p719_p4), 0.0   ;;  %vm234_vm3 = vcmask (!%p719_p4), 253952  }
  0x5c   : > { %s1222_s11 = scalar_lea.vmem %s1277_s2, %s223_s23  ;;  %s1227_s22 = scalar_lea.vmem %s1278_s3, %s223_s23  ;;  %vm1039_vm4 = vmmov (!%p719_p4), 0   ;;  %v242_v9 = vmul.f32 (!%p719_p4), %v238_v5, %v238_v5  ;;  %v243_v10 = vmul.f32 (!%p719_p4), %v239_v6, %v239_v6  ;;  %v1040_v12 = vmov (!%p719_p4), 1.0  }
  0x5d   : > { %233 = vst.msk [vmem:[%s1222_s11] sm:$0x1] (!%p719_p4), %vm232_vm1, %v1038_v7  ;;  %v776_v8 = vpack.c.bf16 (!%p719_p4), %v241_v4, %v240_v3  ;;  %756 = vmatprep.mubr.msk.f32.mxu0 (!%p719_p4), %vm1039_vm4, %v1038_v7 }
  0x5e   : > { %235 = vst.msk [vmem:[%s1227_s22] sm:$0x1] (!%p719_p4), %vm234_vm3, %v1038_v7  ;;  %v780_v11 = vpack.c.bf16 (!%p719_p4), %v243_v10, %v242_v9 }
  0x5f   : > { %778 = vmatpush3.bf16.xpose.msk.msra.mxu0 (!%p719_p4), %vm777_vm2, %v776_v8 }
  0x60   : > { %779 = vmatprep.subr.bf16.mxu0 (!%p719_p4), %v1037_v2 }
  0x67   : > { %782 = vmatpush3.bf16.xpose.msk.msra.mxu0 %vm777_vm2, %v780_v11 }
  0x6e   : > { %757 = vmatmul.mubr.msk.f32.vlgmr.msra.gmra.mrb[0].mxu0 %vm244_vm0, %v1040_v12 }
 0x141   : > { %v326_v13 = vpop.f32.mrb[0].mxu0 }
 0x142   : > { %887 = vrsqrt.f32 %v326_v13  ;;  %v758_v14 = vpop.f32.mrb[1].mxu0  ;;  %vm332_vm5 = vcmp.eq.f32.partialorder %v326_v13, inf  ;;  %v335_v17 = vand.u32 2147483648, %v326_v13  ;;  %vm334_vm6 = vcmp.eq.f32.partialorder %v326_v13, 0.0 }
 0x14c   : > { %v888_v15 = vpop.eup %887 }
 0x14d   : > { %v331_v16 = vmul.f32 %v888_v15, %v326_v13 }
 0x14f   : > { %v333_v18 = vsel %vm332_vm5, %v326_v13, %v331_v16 }
 0x150   : > { %v336_v19 = vsel %vm334_vm6, %v335_v17, %v333_v18 }
 0x151   : > { %v337_v20 = vmax.f32 %v336_v19, 1e-06 }
 0x153   : > { %v338_v21 = vmul.f32 0.07, %v337_v20 }
 0x155   : > { %889 = vrcp.f32 %v338_v21 }
 0x15f   : > { %v890_v22 = vpop.eup %889 }
 0x160   : > { %340 = vst.msk [vmem:[#allocation2] sm:$0x1] %vm234_vm3, %v890_v22 }
 0x161 PF: > { %v342_v23 = vld [vmem:[#allocation5] sm:$0xff]  ;;  %v343_v24 = vld [vmem:[#allocation5 + $0x8] sm:$0xff]  ;;  %vm346_vm7 = vcmask 523264   ;;  %v1041_v25 = vmov 0.0|0.0   ;;  %v341_v27 = vld [vmem:[%s192_s4] sm:$0xff]  ;;  %vm1042_vm9 = vmmov 0  }
 0x162   : > { %783 = vmatprep.subr.bf16.mxu0 %v1041_v25  ;;  %v784_v26 = vpack.c.bf16 %v343_v24, %v342_v23  ;;  %vm785_vm8 = vmpackc.low %vm346_vm7, %vm346_vm7  ;;  %v1043_v28 = vmov 0.0   ;;  %v432_v29 = vmul.f32 %v341_v27, %v341_v27  ;;  %v344_v30 = vld [vmem:[#allocation5 + $0x10] sm:$0xff]  ;;  %v345_v31 = vld [vmem:[#allocation5 + $0x18] sm:$0xff]  ;;  %s731_s21 = sshll.u32 %s1019_s16, 1  ;;  %vm493_vm12 = vcmask 261120  }
 0x163   : > { %767 = vmatprep.mubr.msk.f32.mxu0 %vm1042_vm9, %v1043_v28  ;;  %770 = vmatprep.subr.mxu1 %v1043_v28  ;;  %v788_v33 = vpack.c.bf16 %v345_v31, %v344_v30  ;;  %s457_s6 = sadd.s32 %s1015_s15, %s731_s21  ;;  %vm517_vm13 = vcmask 64512   ;;  %v1044_v55 = vmov 1.0   ;;  %vm481_vm0 = vcmask 7168   ;;  %v511_v31 = vld [vmem:[%s1222_s11] sm:$0x1] }
 0x164   : > { %786 = vmatpush3.bf16.xpose.msk.msra.mxu0 %vm785_vm8, %v784_v26  ;;  %772 = vmatprep.mubr.msk.f32.mxu1 %vm1042_vm9, %v1043_v28  ;;  %v433_v32 = vsel %vm346_vm7, %v432_v29, 0.0  ;;  %s732_s27 = sshll.u32 %s457_s6, 3  ;;  %v591_v11 = vld [vmem:[%s1227_s22] sm:$0x1]  ;;  %vm593_vm1 = vcmask 253952   ;;  %vm515_vm2 = vcmask 0  }
 0x165   : > { %787 = vmatprep.subr.bf16.mxu0 %v1041_v25  ;;  %434 = vadd.xlane.f32.xlu0 %v433_v32  ;;  %s459_s26 = scalar_lea.vmem [#allocation5], %s732_s27 }
 0x166   : > { %v460_v34 = vld [vmem:[%s459_s26] sm:$0xff] }
 0x167   : > { %v465_v35 = vmul.f32 %v460_v34, %v460_v34  ;;  %v730_v46 = vld [vmem:[#allocation2] ss:$0 sm:$0xff]  ;;  %v461_v51 = vmul.f32 %v460_v34, %v341_v27 }
 0x169   : > { %v466_v36 = vsel %vm346_vm7, %v465_v35, 0.0  ;;  %v462_v54 = vsel %vm346_vm7, %v461_v51, 0.0 }
 0x16a   : > { %467 = vadd.xlane.f32.xlu0 %v466_v36 }
 0x16c   : > { %790 = vmatpush3.bf16.xpose.msk.msra.mxu0 %vm785_vm8, %v788_v33 }
 0x173   : > { %768 = vmatmul.mubr.msk.f32.vlgmr.msra.gmra.mrb[0].mxu0 %vm346_vm7, %v341_v27 }
 0x1f2   : > { %v435_v37 = vpop.xlane.xlu0 %434 }
 0x1f3   : > { %891 = vrsqrt.f32 %v435_v37  ;;  %vm438_vm10 = vcmp.eq.f32.partialorder %v435_v37, inf  ;;  %v441_v40 = vand.u32 2147483648, %v435_v37  ;;  %vm440_vm11 = vcmp.eq.f32.partialorder %v435_v37, 0.0 }
 0x1f7   : > { %v468_v56 = vpop.xlane.xlu0 %467 }
 0x1f8   : > { %vm471_vm14 = vcmp.eq.f32.partialorder %v468_v56, inf  ;;  %v474_v59 = vand.u32 2147483648, %v468_v56  ;;  %vm473_vm15 = vcmp.eq.f32.partialorder %v468_v56, 0.0 }
 0x1fd   : > { %v892_v38 = vpop.eup %891 }
 0x1fe   : > { %v437_v39 = vmul.f32 %v892_v38, %v435_v37 }
 0x200   : > { %v439_v41 = vsel %vm438_vm10, %v435_v37, %v437_v39 }
 0x201   : > { %v442_v42 = vsel %vm440_vm11, %v441_v40, %v439_v41 }
 0x202   : > { %v443_v43 = vmax.f32 %v442_v42, 1e-06 }
 0x204   : > { %893 = vrcp.f32 %v443_v43 }
 0x20e   : > { %v894_v44 = vpop.eup %893 }
 0x246   : > { %v428_v45 = vpop.f32.mrb[0].mxu0 }
 0x247   : > { %v445_v47 = vmul.f32 %v894_v44, %v428_v45  ;;  %v769_v48 = vpop.f32.mrb[1].mxu0 }
 0x249   : > { %v453_v49 = vmul.f32 %v730_v46, %v445_v47 }
 0x24b   : > { %v454_v50 = vmul.f32 1.442695, %v453_v49 }
 0x24d   : > { %895 = vpow2.f32 %v454_v50 }
 0x24e   : > { %897 = vrsqrt.f32 %v468_v56 }
 0x257   : > { %v896_v52 = vpop.eup %895 }
 0x258   : > { %771 = vmatpush3.msra.mxu1 %v896_v52  ;;  %v494_v53 = vsel %vm493_vm12, %v896_v52, 0.0  ;;  %v898_v57 = vpop.eup %897 }
 0x259   : > { %495 = vadd.xlane.f32.xlu1 %v494_v53  ;;  %773 = vmatmul.mubr.msk.f32.vlgmr.msra.gmra.mrb[0].mxu1 %vm517_vm13, %v1044_v55  ;;  %v470_v58 = vmul.f32 %v898_v57, %v468_v56 }
 0x25b   : > { %v472_v60 = vsel %vm471_vm14, %v468_v56, %v470_v58 }
 0x25c   : > { %v475_v61 = vsel %vm473_vm15, %v474_v59, %v472_v60 }
 0x25d   : > { %463 = vadd.xlane.f32.xlu1 %v462_v54  ;;  %v477_v62 = vmax.f32 %v475_v61, 1e-06 }
 0x25f   : > { %v478_v63 = vmul.f32 0.07, %v477_v62 }
 0x261   : > { %899 = vrcp.f32 %v478_v63 }
 0x26b   : > { %v900_v4 = vpop.eup %899 }
 0x2e6   : > { %v496_v0 = vpop.xlane.xlu1 %495 }
 0x2e7   : > { %v497_v1 = vadd.f32 3.3e-05, %v496_v0 }
 0x2e9   : > { %901 = vlog2.f32 %v497_v1 }
 0x2ea   : > { %v464_v2 = vpop.xlane.xlu1 %463 }
 0x2eb   : > { %v476_v3 = vmul.f32 %v894_v44, %v464_v2 }
 0x2ed   : > { %v480_v5 = vmul.f32 %v900_v4, %v476_v3 }
 0x2ef   : > { %v482_v6 = vsel %vm481_vm0, %v480_v5, 0.0 }
 0x2f0   : > { %483 = vadd.xlane.f32.xlu0 %v482_v6 }
 0x2f3   : > { %v902_v7 = vpop.eup %901 }
 0x2f4   : > { %v499_v8 = vmul.f32 0.6931472, %v902_v7 }
 0x2f6   : > { %v500_v9 = vsel %vm481_vm0, %v499_v8, 0.0 }
 0x2f7   : > { %501 = vadd.xlane.f32.xlu1 %v500_v9 }
 0x32c   : > { %v587_v10 = vpop.f32.mrb[0].mxu1 }
 0x32d   : > { %v774_v12 = vpop.f32.mrb[1].mxu1  ;;  %v592_v13 = vadd.f32 %v591_v11, %v587_v10 }
 0x32f   : > { %594 = vst.msk [vmem:[%s1227_s22] sm:$0x1] %vm593_vm1, %v592_v13 }
 0x37d   : > { %v484_v14 = vpop.xlane.xlu0 %483 }
 0x37e   : > { %v485_v15 = vrot.slane %v484_v14, 4 }
 0x380   : > { %v486_v16 = vadd.f32 %v485_v15, %v484_v14 }
 0x382   : > { %v487_v17 = vrot.slane %v486_v16, 2 }
 0x384   : > { %v502_v18 = vpop.xlane.xlu1 %501  ;;  %v488_v19 = vadd.f32 %v487_v17, %v486_v16 }
 0x385   : > { %v503_v20 = vrot.slane %v502_v18, 4 }
 0x386   : > { %v489_v21 = vrot.slane %v488_v19, 1 }
 0x387   : > { %v504_v22 = vadd.f32 %v503_v20, %v502_v18 }
 0x388   : > { %v490_v23 = vadd.f32 %v489_v21, %v488_v19 }
 0x389   : > { %v505_v24 = vrot.slane %v504_v22, 2 }
 0x38a   : > { %791 = vpush %v490_v23 }
 0x38b   : > { %v506_v25 = vadd.f32 %v505_v24, %v504_v22 }
 0x38d   : > { %v507_v26 = vrot.slane %v506_v25, 1 }
 0x38f   : > { %v508_v27 = vadd.f32 %v507_v26, %v506_v25 }
 0x391   : > { %793 = vpush %v508_v27 }
 0x3bb   : > { %s792_s15 = spop %791 }
 0x3bc   : > { %v492_v28 = vstv %s792_s15 }
 0x3bd   : > { %v512_v29 = vmul.f32 2.0, %v492_v28 }
 0x3c2   : > { %s794_s16 = spop %793 }
 0x3c3   : > { %v510_v30 = vstv %s794_s16 }
 0x3c4   : > { %v513_v32 = vsub.f32 %v512_v29, %v510_v30 }
 0x3c6   : > { %v514_v33 = vadd.f32 %v513_v32, %v511_v31 }
 0x3c8   : > { %516 = vst.msk [vmem:[%s1222_s11] sm:$0x1] %vm515_vm2, %v514_v33 }
 0x3c9 PF: > { %s18_s19 = sadd.s32 1, %s1031_s19   ;;  %s1291_s7 = smov %s1300_s12 }
 0x3ca   : > { %p15_p5 = scmp.ge.s32.totalorder %s18_s19, 6   ;;  %s1292_s12 = smov %s1007_s13 }
 0x3cb   : > { %s1293_s13 = smov %s1011_s14  ;;  %s1294_s14 = smov %s1174_s24 }
 0x3cc   : > { %s1295_s15 = smov %s1023_s17  ;;  %s1296_s16 = smov %s1027_s18 }
 0x3cd   : > { %s1297_s17 = smov %s1291_s7  ;;  %s1298_s18 = smov %s1304_s20 }
 0x3ce   :  { %17 = sbr.rel (!%p15_p5) target bundleno = 6 (0x6), region = 89 }
 0x3d5   :  { %624 = vsyncpa [#allocation4], 1 }
 0x3d6   :  { %626 = vsyncpa [#allocation4 + $0x1], 1 }
 0x3d7   :  { %627 = vsyncpa [#allocation6], 1 }

</bundles_post_ra>
